<compile_context>
chip_gen: v7x
topology: tpu7x:2x2x1
jax: 0.10.0
libtpu: 0.0.40
codegen_flags: <defaults>
</compile_context>

<pallas_src>
import functools
import math

import jax
import jax.numpy as jnp
from jax.experimental import pallas as pl
from jax.experimental.pallas import tpu as pltpu


# ---------------------------------------------------------------------------
# Fused Pallas kernel: one grid step = one batch element, all heads.
# ---------------------------------------------------------------------------

def _mha_fused_kernel(q_in_ref, k_in_ref, v_in_ref,
                      wq_ref, bq_ref, wk_ref, bk_ref, wv_ref, bv_ref,
                      wo_ref, bo_ref,
                      o_ref, *, h, d_k, operand_dtype):
    d_model = h * d_k

    def cast(x):
        # Optional operand narrowing for the MXU (v6e/v7x). Accumulation and
        # all softmax math stay in f32.
        return x if operand_dtype is None else x.astype(operand_dtype)

    def project(x_ref, w_ref, b_ref):
        y = jnp.dot(cast(x_ref[0]), cast(w_ref[...]),
                    preferred_element_type=jnp.float32)
        return y + b_ref[...].astype(jnp.float32)        # (S, d_model), f32

    # Pre-scale q: (Sq x d_model) multiplies instead of (Sq x Sk) divides.
    q = project(q_in_ref, wq_ref, bq_ref) * (1.0 / math.sqrt(d_k))
    k = project(k_in_ref, wk_ref, bk_ref)
    v = project(v_in_ref, wv_ref, bv_ref)

    sq = q.shape[0]
    acc = jnp.zeros((sq, d_model), jnp.float32)

    # Statically-unrolled loop over heads: all heads handled in this grid step,
    # activations kept in the lane-dense (S, d_model) layout (static lane slices).
    for hh in range(h):
        lo = hh * d_k
        qh = q[:, lo:lo + d_k]                            # (Sq, d_k)
        kh = k[:, lo:lo + d_k]                            # (Sk, d_k)
        vh = v[:, lo:lo + d_k]                            # (Sk, d_k)

        # scores = qh @ kh^T without materializing an explicit transpose of K.
        s = jax.lax.dot_general(
            cast(qh), cast(kh),
            dimension_numbers=(((1,), (1,)), ((), ())),
            preferred_element_type=jnp.float32)           # (Sq, Sk)

        # TODO(synk): mask == 0 -> -1e9 would be applied here.
        s = s - jnp.max(s, axis=-1, keepdims=True)        # stable softmax
        e = jnp.exp(s)
        inv = pl.reciprocal(jnp.sum(e, axis=-1, keepdims=True), approx=True)
        p = e * inv                                       # softmax probs (f32)

        ctx = jnp.dot(cast(p), cast(vh),
                      preferred_element_type=jnp.float32)  # (Sq, d_k)

        # Fold this head's slice of the output projection into the accumulator:
        #   concat_h(ctx_h) @ Wo^T  ==  sum_h ctx_h @ Wo^T[lo:lo+d_k, :]
        acc = acc + jnp.dot(cast(ctx), cast(wo_ref[lo:lo + d_k, :]),
                            preferred_element_type=jnp.float32)

    o_ref[0] = (acc + bo_ref[...].astype(jnp.float32)).astype(o_ref.dtype)


# ---------------------------------------------------------------------------
# Wrapper
# ---------------------------------------------------------------------------

def multi_headed_attention(params, query, key, value, h, *, operand_dtype=None):
    """query/key/value: (B, S, d_model). Returns (B, S, d_model)."""
    B, Sq, d_model = query.shape
    Sk = key.shape[1]
    assert d_model % h == 0
    d_k = d_model // h

    kernel = functools.partial(_mha_fused_kernel, h=h, d_k=d_k,
                               operand_dtype=operand_dtype)

    act_q_spec = pl.BlockSpec((1, Sq, d_model), lambda b: (b, 0, 0))
    act_kv_spec = pl.BlockSpec((1, Sk, d_model), lambda b: (b, 0, 0))
    weight_spec = pl.BlockSpec((d_model, d_model), lambda b: (0, 0))
    bias_spec = pl.BlockSpec((1, d_model), lambda b: (0, 0))

    out = pl.pallas_call(
        kernel,
        out_shape=jax.ShapeDtypeStruct((B, Sq, d_model), query.dtype),
        grid=(B,),
        in_specs=[
            act_q_spec, act_kv_spec, act_kv_spec,
            weight_spec, bias_spec,   # Q projection
            weight_spec, bias_spec,   # K projection
            weight_spec, bias_spec,   # V projection
            weight_spec, bias_spec,   # output projection
        ],
        out_specs=pl.BlockSpec((1, Sq, d_model), lambda b: (b, 0, 0)),
        compiler_params=pltpu.CompilerParams(
            dimension_semantics=("parallel",)),           # lets v7x split B over 2 TCs
    )(
        query, key, value,
        params["wq"].T, params["bq"].reshape(1, d_model),
        params["wk"].T, params["bk"].reshape(1, d_model),
        params["wv"].T, params["bv"].reshape(1, d_model),
        params["wo"].T, params["bo"].reshape(1, d_model),
    )
    return out


# ---------------------------------------------------------------------------
# Pure-JAX reference (for correctness check)
# ---------------------------------------------------------------------------

def reference_mha(params, query, key, value, h):
    B, Sq, d_model = query.shape
    d_k = d_model // h

    def project(x, w, b):
        y = x @ w.T + b
        return y.reshape(x.shape[0], x.shape[1], h, d_k).transpose(0, 2, 1, 3)

    q = project(query, params["wq"], params["bq"])
    k = project(key, params["wk"], params["bk"])
    v = project(value, params["wv"], params["bv"])
    scores = jnp.einsum("bhqd,bhkd->bhqk", q, k) / math.sqrt(d_k)
    p = jax.nn.softmax(scores, axis=-1)
    x = jnp.einsum("bhqk,bhkd->bhqd", p, v)
    x = x.transpose(0, 2, 1, 3).reshape(B, Sq, d_model)
    return x @ params["wo"].T + params["bo"]


# ---------------------------------------------------------------------------
# Main
# ---------------------------------------------------------------------------

if __name__ == "__main__":
    h = 4
    d_model = 32
    B, S = 2, 8
    dtype = jnp.float32

    key0 = jax.random.PRNGKey(0)
    keys = jax.random.split(key0, 12)

    # 4 nn.Linear(d_model, d_model) layers: W is (out, in), b is (out,)
    scale = 1.0 / math.sqrt(d_model)
    params = {
        "wq": jax.random.uniform(keys[0], (d_model, d_model), dtype, -scale, scale),
        "bq": jax.random.uniform(keys[1], (d_model,), dtype, -scale, scale),
        "wk": jax.random.uniform(keys[2], (d_model, d_model), dtype, -scale, scale),
        "bk": jax.random.uniform(keys[3], (d_model,), dtype, -scale, scale),
        "wv": jax.random.uniform(keys[4], (d_model, d_model), dtype, -scale, scale),
        "bv": jax.random.uniform(keys[5], (d_model,), dtype, -scale, scale),
        "wo": jax.random.uniform(keys[6], (d_model, d_model), dtype, -scale, scale),
        "bo": jax.random.uniform(keys[7], (d_model,), dtype, -scale, scale),
    }

    query = jax.random.normal(keys[8], (B, S, d_model), dtype)
    key_in = jax.random.normal(keys[9], (B, S, d_model), dtype)
    value = jax.random.normal(keys[10], (B, S, d_model), dtype)

    ref_out = reference_mha(params, query, key_in, value, h)

    # f32-operand path (v5e-safe, tight check).
    out = multi_headed_attention(params, query, key_in, value, h)
    out = jax.block_until_ready(out)
    assert out.shape == ref_out.shape
    assert jnp.allclose(out, ref_out, atol=2e-3, rtol=2e-3)

    # bf16 MXU-operand path (v6e/v7x advice): f32 accumulation + f32 softmax,
    # so only operand-cast rounding differs from the reference.
    out_bf16 = multi_headed_attention(params, query, key_in, value, h,
                                      operand_dtype=jnp.bfloat16)
    out_bf16 = jax.block_until_ready(out_bf16)
    assert jnp.allclose(out_bf16, ref_out, atol=5e-2, rtol=5e-2)

    print("KERNEL_OK")
</pallas_src>

<mosaic_0001>
module attributes {stable_mosaic.version = 11 : i64} {
  func.func @_mha_fused_kernel(%arg0: i32, %arg1: memref<1x8x32xf32, #tpu.memory_space<vmem>>, %arg2: memref<1x8x32xf32, #tpu.memory_space<vmem>>, %arg3: memref<1x8x32xf32, #tpu.memory_space<vmem>>, %arg4: memref<32x32xf32, #tpu.memory_space<vmem>>, %arg5: memref<1x32xf32, #tpu.memory_space<vmem>>, %arg6: memref<32x32xf32, #tpu.memory_space<vmem>>, %arg7: memref<1x32xf32, #tpu.memory_space<vmem>>, %arg8: memref<32x32xf32, #tpu.memory_space<vmem>>, %arg9: memref<1x32xf32, #tpu.memory_space<vmem>>, %arg10: memref<32x32xf32, #tpu.memory_space<vmem>>, %arg11: memref<1x32xf32, #tpu.memory_space<vmem>>, %arg12: memref<1x8x32xf32, #tpu.memory_space<vmem>>) attributes {dimension_semantics = [#tpu.dimension_semantics<parallel>], iteration_bounds = array<i64: 2>, scalar_prefetch = 0 : i64, scratch_operands = 0 : i64, tpu.core_type = #tpu.core_type<tc>, window_params = [{transform_indices = @transform_0, window_bounds = array<i64: 1, 8, 32>}, {transform_indices = @transform_1, window_bounds = array<i64: 1, 8, 32>}, {transform_indices = @transform_2, window_bounds = array<i64: 1, 8, 32>}, {pipeline_mode = #tpu.pipeline_mode<synchronous>, transform_indices = @transform_3, window_bounds = array<i64: 32, 32>}, {pipeline_mode = #tpu.pipeline_mode<synchronous>, transform_indices = @transform_4, window_bounds = array<i64: 1, 32>}, {pipeline_mode = #tpu.pipeline_mode<synchronous>, transform_indices = @transform_5, window_bounds = array<i64: 32, 32>}, {pipeline_mode = #tpu.pipeline_mode<synchronous>, transform_indices = @transform_6, window_bounds = array<i64: 1, 32>}, {pipeline_mode = #tpu.pipeline_mode<synchronous>, transform_indices = @transform_7, window_bounds = array<i64: 32, 32>}, {pipeline_mode = #tpu.pipeline_mode<synchronous>, transform_indices = @transform_8, window_bounds = array<i64: 1, 32>}, {pipeline_mode = #tpu.pipeline_mode<synchronous>, transform_indices = @transform_9, window_bounds = array<i64: 32, 32>}, {pipeline_mode = #tpu.pipeline_mode<synchronous>, transform_indices = @transform_10, window_bounds = array<i64: 1, 32>}, {transform_indices = @transform_11, window_bounds = array<i64: 1, 8, 32>}]} {
    %c0 = arith.constant 0 : index
    %c0_0 = arith.constant 0 : index
    %c0_1 = arith.constant 0 : index
    %0 = vector.load %arg1[%c0, %c0_0, %c0_1] : memref<1x8x32xf32, #tpu.memory_space<vmem>>, vector<1x8x32xf32>
    %1 = vector.shape_cast %0 : vector<1x8x32xf32> to vector<8x32xf32>
    %c0_2 = arith.constant 0 : index
    %c0_3 = arith.constant 0 : index
    %2 = vector.load %arg4[%c0_2, %c0_3] : memref<32x32xf32, #tpu.memory_space<vmem>>, vector<32x32xf32>
    %cst = arith.constant dense<0.000000e+00> : vector<8x32xf32>
    %3 = tpu.matmul %1, %2, %cst {dimension_numbers = #tpu.dot_dimension_numbers<[1], [0], [0], [1], [0, 0, 1, 1], [], []>} : vector<8x32xf32>, vector<32x32xf32>, vector<8x32xf32> -> vector<8x32xf32>
    %c0_4 = arith.constant 0 : index
    %c0_5 = arith.constant 0 : index
    %4 = vector.load %arg5[%c0_4, %c0_5] : memref<1x32xf32, #tpu.memory_space<vmem>>, vector<1x32xf32>
    %5 = vector.broadcast %4 : vector<1x32xf32> to vector<8x32xf32>
    %6 = arith.addf %3, %5 : vector<8x32xf32>
    %cst_6 = arith.constant 0.353553385 : f32
    %7 = vector.broadcast %cst_6 : f32 to vector<8x32xf32>
    %8 = arith.mulf %6, %7 : vector<8x32xf32>
    %c0_7 = arith.constant 0 : index
    %c0_8 = arith.constant 0 : index
    %c0_9 = arith.constant 0 : index
    %9 = vector.load %arg2[%c0_7, %c0_8, %c0_9] : memref<1x8x32xf32, #tpu.memory_space<vmem>>, vector<1x8x32xf32>
    %10 = vector.shape_cast %9 : vector<1x8x32xf32> to vector<8x32xf32>
    %c0_10 = arith.constant 0 : index
    %c0_11 = arith.constant 0 : index
    %11 = vector.load %arg6[%c0_10, %c0_11] : memref<32x32xf32, #tpu.memory_space<vmem>>, vector<32x32xf32>
    %cst_12 = arith.constant dense<0.000000e+00> : vector<8x32xf32>
    %12 = tpu.matmul %10, %11, %cst_12 {dimension_numbers = #tpu.dot_dimension_numbers<[1], [0], [0], [1], [0, 0, 1, 1], [], []>} : vector<8x32xf32>, vector<32x32xf32>, vector<8x32xf32> -> vector<8x32xf32>
    %c0_13 = arith.constant 0 : index
    %c0_14 = arith.constant 0 : index
    %13 = vector.load %arg7[%c0_13, %c0_14] : memref<1x32xf32, #tpu.memory_space<vmem>>, vector<1x32xf32>
    %14 = vector.broadcast %13 : vector<1x32xf32> to vector<8x32xf32>
    %15 = arith.addf %12, %14 : vector<8x32xf32>
    %c0_15 = arith.constant 0 : index
    %c0_16 = arith.constant 0 : index
    %c0_17 = arith.constant 0 : index
    %16 = vector.load %arg3[%c0_15, %c0_16, %c0_17] : memref<1x8x32xf32, #tpu.memory_space<vmem>>, vector<1x8x32xf32>
    %17 = vector.shape_cast %16 : vector<1x8x32xf32> to vector<8x32xf32>
    %c0_18 = arith.constant 0 : index
    %c0_19 = arith.constant 0 : index
    %18 = vector.load %arg8[%c0_18, %c0_19] : memref<32x32xf32, #tpu.memory_space<vmem>>, vector<32x32xf32>
    %cst_20 = arith.constant dense<0.000000e+00> : vector<8x32xf32>
    %19 = tpu.matmul %17, %18, %cst_20 {dimension_numbers = #tpu.dot_dimension_numbers<[1], [0], [0], [1], [0, 0, 1, 1], [], []>} : vector<8x32xf32>, vector<32x32xf32>, vector<8x32xf32> -> vector<8x32xf32>
    %c0_21 = arith.constant 0 : index
    %c0_22 = arith.constant 0 : index
    %20 = vector.load %arg9[%c0_21, %c0_22] : memref<1x32xf32, #tpu.memory_space<vmem>>, vector<1x32xf32>
    %21 = vector.broadcast %20 : vector<1x32xf32> to vector<8x32xf32>
    %22 = arith.addf %19, %21 : vector<8x32xf32>
    %cst_23 = arith.constant 0.000000e+00 : f32
    %23 = vector.broadcast %cst_23 : f32 to vector<8x32xf32>
    %24 = vector.extract_strided_slice %8 {offsets = [0, 0], sizes = [8, 8], strides = [1, 1]} : vector<8x32xf32> to vector<8x8xf32>
    %25 = vector.extract_strided_slice %15 {offsets = [0, 0], sizes = [8, 8], strides = [1, 1]} : vector<8x32xf32> to vector<8x8xf32>
    %26 = vector.extract_strided_slice %22 {offsets = [0, 0], sizes = [8, 8], strides = [1, 1]} : vector<8x32xf32> to vector<8x8xf32>
    %cst_24 = arith.constant dense<0.000000e+00> : vector<8x8xf32>
    %27 = tpu.matmul %24, %25, %cst_24 {dimension_numbers = #tpu.dot_dimension_numbers<[1], [1], [0], [0], [0, 0, 1, 0], [], []>} : vector<8x8xf32>, vector<8x8xf32>, vector<8x8xf32> -> vector<8x8xf32>
    %cst_25 = arith.constant dense<0xFF800000> : vector<8xf32>
    %28 = vector.multi_reduction <maximumf>, %27, %cst_25 [1] : vector<8x8xf32> to vector<8xf32>
    %29 = vector.shape_cast %28 : vector<8xf32> to vector<8x1xf32>
    %30 = vector.broadcast %29 : vector<8x1xf32> to vector<8x8xf32>
    %31 = arith.subf %27, %30 : vector<8x8xf32>
    %32 = math.exp %31 : vector<8x8xf32>
    %cst_26 = arith.constant dense<0.000000e+00> : vector<8xf32>
    %33 = vector.multi_reduction <add>, %32, %cst_26 [1] : vector<8x8xf32> to vector<8xf32>
    %34 = vector.shape_cast %33 : vector<8xf32> to vector<8x1xf32>
    %35 = tpu.reciprocal %34 {approx = true} : vector<8x1xf32> -> vector<8x1xf32>
    %36 = vector.broadcast %35 : vector<8x1xf32> to vector<8x8xf32>
    %37 = arith.mulf %32, %36 : vector<8x8xf32>
    %cst_27 = arith.constant dense<0.000000e+00> : vector<8x8xf32>
    %38 = tpu.matmul %37, %26, %cst_27 {dimension_numbers = #tpu.dot_dimension_numbers<[1], [0], [0], [1], [0, 0, 1, 1], [], []>} : vector<8x8xf32>, vector<8x8xf32>, vector<8x8xf32> -> vector<8x8xf32>
    %c0_28 = arith.constant 0 : index
    %c0_29 = arith.constant 0 : index
    %39 = vector.load %arg10[%c0_28, %c0_29] : memref<32x32xf32, #tpu.memory_space<vmem>>, vector<8x32xf32>
    %cst_30 = arith.constant dense<0.000000e+00> : vector<8x32xf32>
    %40 = tpu.matmul %38, %39, %cst_30 {dimension_numbers = #tpu.dot_dimension_numbers<[1], [0], [0], [1], [0, 0, 1, 1], [], []>} : vector<8x8xf32>, vector<8x32xf32>, vector<8x32xf32> -> vector<8x32xf32>
    %41 = arith.addf %23, %40 : vector<8x32xf32>
    %42 = vector.extract_strided_slice %8 {offsets = [0, 8], sizes = [8, 8], strides = [1, 1]} : vector<8x32xf32> to vector<8x8xf32>
    %43 = vector.extract_strided_slice %15 {offsets = [0, 8], sizes = [8, 8], strides = [1, 1]} : vector<8x32xf32> to vector<8x8xf32>
    %44 = vector.extract_strided_slice %22 {offsets = [0, 8], sizes = [8, 8], strides = [1, 1]} : vector<8x32xf32> to vector<8x8xf32>
    %cst_31 = arith.constant dense<0.000000e+00> : vector<8x8xf32>
    %45 = tpu.matmul %42, %43, %cst_31 {dimension_numbers = #tpu.dot_dimension_numbers<[1], [1], [0], [0], [0, 0, 1, 0], [], []>} : vector<8x8xf32>, vector<8x8xf32>, vector<8x8xf32> -> vector<8x8xf32>
    %cst_32 = arith.constant dense<0xFF800000> : vector<8xf32>
    %46 = vector.multi_reduction <maximumf>, %45, %cst_32 [1] : vector<8x8xf32> to vector<8xf32>
    %47 = vector.shape_cast %46 : vector<8xf32> to vector<8x1xf32>
    %48 = vector.broadcast %47 : vector<8x1xf32> to vector<8x8xf32>
    %49 = arith.subf %45, %48 : vector<8x8xf32>
    %50 = math.exp %49 : vector<8x8xf32>
    %cst_33 = arith.constant dense<0.000000e+00> : vector<8xf32>
    %51 = vector.multi_reduction <add>, %50, %cst_33 [1] : vector<8x8xf32> to vector<8xf32>
    %52 = vector.shape_cast %51 : vector<8xf32> to vector<8x1xf32>
    %53 = tpu.reciprocal %52 {approx = true} : vector<8x1xf32> -> vector<8x1xf32>
    %54 = vector.broadcast %53 : vector<8x1xf32> to vector<8x8xf32>
    %55 = arith.mulf %50, %54 : vector<8x8xf32>
    %cst_34 = arith.constant dense<0.000000e+00> : vector<8x8xf32>
    %56 = tpu.matmul %55, %44, %cst_34 {dimension_numbers = #tpu.dot_dimension_numbers<[1], [0], [0], [1], [0, 0, 1, 1], [], []>} : vector<8x8xf32>, vector<8x8xf32>, vector<8x8xf32> -> vector<8x8xf32>
    %c8 = arith.constant 8 : index
    %c0_35 = arith.constant 0 : index
    %57 = vector.load %arg10[%c8, %c0_35] : memref<32x32xf32, #tpu.memory_space<vmem>>, vector<8x32xf32>
    %cst_36 = arith.constant dense<0.000000e+00> : vector<8x32xf32>
    %58 = tpu.matmul %56, %57, %cst_36 {dimension_numbers = #tpu.dot_dimension_numbers<[1], [0], [0], [1], [0, 0, 1, 1], [], []>} : vector<8x8xf32>, vector<8x32xf32>, vector<8x32xf32> -> vector<8x32xf32>
    %59 = arith.addf %41, %58 : vector<8x32xf32>
    %60 = vector.extract_strided_slice %8 {offsets = [0, 16], sizes = [8, 8], strides = [1, 1]} : vector<8x32xf32> to vector<8x8xf32>
    %61 = vector.extract_strided_slice %15 {offsets = [0, 16], sizes = [8, 8], strides = [1, 1]} : vector<8x32xf32> to vector<8x8xf32>
    %62 = vector.extract_strided_slice %22 {offsets = [0, 16], sizes = [8, 8], strides = [1, 1]} : vector<8x32xf32> to vector<8x8xf32>
    %cst_37 = arith.constant dense<0.000000e+00> : vector<8x8xf32>
    %63 = tpu.matmul %60, %61, %cst_37 {dimension_numbers = #tpu.dot_dimension_numbers<[1], [1], [0], [0], [0, 0, 1, 0], [], []>} : vector<8x8xf32>, vector<8x8xf32>, vector<8x8xf32> -> vector<8x8xf32>
    %cst_38 = arith.constant dense<0xFF800000> : vector<8xf32>
    %64 = vector.multi_reduction <maximumf>, %63, %cst_38 [1] : vector<8x8xf32> to vector<8xf32>
    %65 = vector.shape_cast %64 : vector<8xf32> to vector<8x1xf32>
    %66 = vector.broadcast %65 : vector<8x1xf32> to vector<8x8xf32>
    %67 = arith.subf %63, %66 : vector<8x8xf32>
    %68 = math.exp %67 : vector<8x8xf32>
    %cst_39 = arith.constant dense<0.000000e+00> : vector<8xf32>
    %69 = vector.multi_reduction <add>, %68, %cst_39 [1] : vector<8x8xf32> to vector<8xf32>
    %70 = vector.shape_cast %69 : vector<8xf32> to vector<8x1xf32>
    %71 = tpu.reciprocal %70 {approx = true} : vector<8x1xf32> -> vector<8x1xf32>
    %72 = vector.broadcast %71 : vector<8x1xf32> to vector<8x8xf32>
    %73 = arith.mulf %68, %72 : vector<8x8xf32>
    %cst_40 = arith.constant dense<0.000000e+00> : vector<8x8xf32>
    %74 = tpu.matmul %73, %62, %cst_40 {dimension_numbers = #tpu.dot_dimension_numbers<[1], [0], [0], [1], [0, 0, 1, 1], [], []>} : vector<8x8xf32>, vector<8x8xf32>, vector<8x8xf32> -> vector<8x8xf32>
    %c16 = arith.constant 16 : index
    %c0_41 = arith.constant 0 : index
    %75 = vector.load %arg10[%c16, %c0_41] : memref<32x32xf32, #tpu.memory_space<vmem>>, vector<8x32xf32>
    %cst_42 = arith.constant dense<0.000000e+00> : vector<8x32xf32>
    %76 = tpu.matmul %74, %75, %cst_42 {dimension_numbers = #tpu.dot_dimension_numbers<[1], [0], [0], [1], [0, 0, 1, 1], [], []>} : vector<8x8xf32>, vector<8x32xf32>, vector<8x32xf32> -> vector<8x32xf32>
    %77 = arith.addf %59, %76 : vector<8x32xf32>
    %78 = vector.extract_strided_slice %8 {offsets = [0, 24], sizes = [8, 8], strides = [1, 1]} : vector<8x32xf32> to vector<8x8xf32>
    %79 = vector.extract_strided_slice %15 {offsets = [0, 24], sizes = [8, 8], strides = [1, 1]} : vector<8x32xf32> to vector<8x8xf32>
    %80 = vector.extract_strided_slice %22 {offsets = [0, 24], sizes = [8, 8], strides = [1, 1]} : vector<8x32xf32> to vector<8x8xf32>
    %cst_43 = arith.constant dense<0.000000e+00> : vector<8x8xf32>
    %81 = tpu.matmul %78, %79, %cst_43 {dimension_numbers = #tpu.dot_dimension_numbers<[1], [1], [0], [0], [0, 0, 1, 0], [], []>} : vector<8x8xf32>, vector<8x8xf32>, vector<8x8xf32> -> vector<8x8xf32>
    %cst_44 = arith.constant dense<0xFF800000> : vector<8xf32>
    %82 = vector.multi_reduction <maximumf>, %81, %cst_44 [1] : vector<8x8xf32> to vector<8xf32>
    %83 = vector.shape_cast %82 : vector<8xf32> to vector<8x1xf32>
    %84 = vector.broadcast %83 : vector<8x1xf32> to vector<8x8xf32>
    %85 = arith.subf %81, %84 : vector<8x8xf32>
    %86 = math.exp %85 : vector<8x8xf32>
    %cst_45 = arith.constant dense<0.000000e+00> : vector<8xf32>
    %87 = vector.multi_reduction <add>, %86, %cst_45 [1] : vector<8x8xf32> to vector<8xf32>
    %88 = vector.shape_cast %87 : vector<8xf32> to vector<8x1xf32>
    %89 = tpu.reciprocal %88 {approx = true} : vector<8x1xf32> -> vector<8x1xf32>
    %90 = vector.broadcast %89 : vector<8x1xf32> to vector<8x8xf32>
    %91 = arith.mulf %86, %90 : vector<8x8xf32>
    %cst_46 = arith.constant dense<0.000000e+00> : vector<8x8xf32>
    %92 = tpu.matmul %91, %80, %cst_46 {dimension_numbers = #tpu.dot_dimension_numbers<[1], [0], [0], [1], [0, 0, 1, 1], [], []>} : vector<8x8xf32>, vector<8x8xf32>, vector<8x8xf32> -> vector<8x8xf32>
    %c24 = arith.constant 24 : index
    %c0_47 = arith.constant 0 : index
    %93 = vector.load %arg10[%c24, %c0_47] : memref<32x32xf32, #tpu.memory_space<vmem>>, vector<8x32xf32>
    %cst_48 = arith.constant dense<0.000000e+00> : vector<8x32xf32>
    %94 = tpu.matmul %92, %93, %cst_48 {dimension_numbers = #tpu.dot_dimension_numbers<[1], [0], [0], [1], [0, 0, 1, 1], [], []>} : vector<8x8xf32>, vector<8x32xf32>, vector<8x32xf32> -> vector<8x32xf32>
    %95 = arith.addf %77, %94 : vector<8x32xf32>
    %c0_49 = arith.constant 0 : index
    %c0_50 = arith.constant 0 : index
    %96 = vector.load %arg11[%c0_49, %c0_50] : memref<1x32xf32, #tpu.memory_space<vmem>>, vector<1x32xf32>
    %97 = vector.broadcast %96 : vector<1x32xf32> to vector<8x32xf32>
    %98 = arith.addf %95, %97 : vector<8x32xf32>
    %c0_51 = arith.constant 0 : index
    %c0_52 = arith.constant 0 : index
    %c0_53 = arith.constant 0 : index
    %99 = vector.load %arg12[%c0_51, %c0_52, %c0_53] : memref<1x8x32xf32, #tpu.memory_space<vmem>>, vector<1x8x32xf32>
    %100 = vector.shape_cast %99 : vector<1x8x32xf32> to vector<8x32xf32>
    %101 = vector.shape_cast %98 : vector<8x32xf32> to vector<1x8x32xf32>
    tpu.vector_store %arg12[%c0_51, %c0_52, %c0_53], %101 {strides = array<i32>} : memref<1x8x32xf32, #tpu.memory_space<vmem>>, vector<1x8x32xf32>,
    return
  }
  func.func @transform_0(%arg0: i32) -> (i32, i32, i32) {
    %c0_i32 = arith.constant 0 : i32
    %c0_i32_0 = arith.constant 0 : i32
    %c0_i32_1 = arith.constant 0 : i32
    return %arg0, %c0_i32, %c0_i32_0 : i32, i32, i32
  }
  func.func @transform_1(%arg0: i32) -> (i32, i32, i32) {
    %c0_i32 = arith.constant 0 : i32
    %c0_i32_0 = arith.constant 0 : i32
    %c0_i32_1 = arith.constant 0 : i32
    return %arg0, %c0_i32, %c0_i32_0 : i32, i32, i32
  }
  func.func @transform_2(%arg0: i32) -> (i32, i32, i32) {
    %c0_i32 = arith.constant 0 : i32
    %c0_i32_0 = arith.constant 0 : i32
    %c0_i32_1 = arith.constant 0 : i32
    return %arg0, %c0_i32, %c0_i32_0 : i32, i32, i32
  }
  func.func @transform_3(%arg0: i32) -> (i32, i32) {
    %c0_i32 = arith.constant 0 : i32
    %c0_i32_0 = arith.constant 0 : i32
    %c0_i32_1 = arith.constant 0 : i32
    return %c0_i32, %c0_i32_0 : i32, i32
  }
  func.func @transform_4(%arg0: i32) -> (i32, i32) {
    %c0_i32 = arith.constant 0 : i32
    %c0_i32_0 = arith.constant 0 : i32
    %c0_i32_1 = arith.constant 0 : i32
    return %c0_i32, %c0_i32_0 : i32, i32
  }
  func.func @transform_5(%arg0: i32) -> (i32, i32) {
    %c0_i32 = arith.constant 0 : i32
    %c0_i32_0 = arith.constant 0 : i32
    %c0_i32_1 = arith.constant 0 : i32
    return %c0_i32, %c0_i32_0 : i32, i32
  }
  func.func @transform_6(%arg0: i32) -> (i32, i32) {
    %c0_i32 = arith.constant 0 : i32
    %c0_i32_0 = arith.constant 0 : i32
    %c0_i32_1 = arith.constant 0 : i32
    return %c0_i32, %c0_i32_0 : i32, i32
  }
  func.func @transform_7(%arg0: i32) -> (i32, i32) {
    %c0_i32 = arith.constant 0 : i32
    %c0_i32_0 = arith.constant 0 : i32
    %c0_i32_1 = arith.constant 0 : i32
    return %c0_i32, %c0_i32_0 : i32, i32
  }
  func.func @transform_8(%arg0: i32) -> (i32, i32) {
    %c0_i32 = arith.constant 0 : i32
    %c0_i32_0 = arith.constant 0 : i32
    %c0_i32_1 = arith.constant 0 : i32
    return %c0_i32, %c0_i32_0 : i32, i32
  }
  func.func @transform_9(%arg0: i32) -> (i32, i32) {
    %c0_i32 = arith.constant 0 : i32
    %c0_i32_0 = arith.constant 0 : i32
    %c0_i32_1 = arith.constant 0 : i32
    return %c0_i32, %c0_i32_0 : i32, i32
  }
  func.func @transform_10(%arg0: i32) -> (i32, i32) {
    %c0_i32 = arith.constant 0 : i32
    %c0_i32_0 = arith.constant 0 : i32
    %c0_i32_1 = arith.constant 0 : i32
    return %c0_i32, %c0_i32_0 : i32, i32
  }
  func.func @transform_11(%arg0: i32) -> (i32, i32, i32) {
    %c0_i32 = arith.constant 0 : i32
    %c0_i32_0 = arith.constant 0 : i32
    %c0_i32_1 = arith.constant 0 : i32
    return %arg0, %c0_i32, %c0_i32_0 : i32, i32, i32
  }
}

</mosaic_0001>

<bundles_post_ra>
// kernel: tpu_custom_call.1
= control target key start
LH: loop header
LB: loop body
LE: loop exit
PB: predicated region body
PF: predicated region fallthrough
CT: control target
= control target key end

     0   :  { %s3063_s0 = inlined_call_operand.hbm [shape: f32[2,8,32], index: 0, kind: input, shape index: {}]   ;;  %s3064_s1 = inlined_call_operand.hbm [shape: f32[2,8,32], index: 1, kind: input, shape index: {}]   ;;  %s3065_s2 = inlined_call_operand.hbm [shape: f32[2,8,32], index: 2, kind: input, shape index: {}]   ;;  %s3066_s3 = inlined_call_operand.hbm [shape: f32[32,32], index: 3, kind: input, shape index: {}]   ;;  %s3067_s4 = inlined_call_operand.vmem [shape: f32[1,32], index: 4, kind: input, shape index: {}]   ;;  %s3068_s5 = inlined_call_operand.hbm [shape: f32[32,32], index: 5, kind: input, shape index: {}]   ;;  %s3069_s6 = inlined_call_operand.vmem [shape: f32[1,32], index: 6, kind: input, shape index: {}]   ;;  %s3070_s7 = inlined_call_operand.hbm [shape: f32[32,32], index: 7, kind: input, shape index: {}]   ;;  %s3071_s8 = inlined_call_operand.hbm [shape: f32[1,32], index: 8, kind: input, shape index: {}]   ;;  %s3072_s9 = inlined_call_operand.vmem [shape: f32[32,32], index: 9, kind: input, shape index: {}]   ;;  %s3073_s10 = inlined_call_operand.vmem [shape: f32[1,32], index: 10, kind: input, shape index: {}]   ;;  %s3074_s11 = inlined_call_operand.hbm [shape: f32[2,8,32], index: 11, kind: output, shape index: {}]  }
   0x1   :  { %3099 = sst [smem:[#allocation26_spill]] %s3064_s1 }
   0x2   :  { %3100 = sst [smem:[#allocation27_spill]] %s3066_s3 }
   0x3   :  { %3101 = sst [smem:[#allocation28_spill]] %s3067_s4 }
   0x4   :  { %3102 = sst [smem:[#allocation29_spill]] %s3070_s7 }
   0x5   :  { %3103 = sst [smem:[#allocation30_spill]] %s3072_s9 }
   0x6   :  { %3104 = sst [smem:[#allocation31_spill]] %s3073_s10 }
   0x7   :  { %3105 = sst [smem:[#allocation32_spill]] %s3074_s11 }
   0x8   :  { %16 = vsyncpa [#allocation3], 0 }
   0x9   :  { %18 = vsyncpa [#allocation3 + $0x1], 0 }
   0xa   :  { %19 = vsyncpa [#allocation6], 0 }
   0xb   :  { %21 = vsyncpa [#allocation6 + $0x1], 0 }
   0xc   :  { %22 = vsyncpa [#allocation9], 0 }
   0xd   :  { %23 = vsyncpa [#allocation12], 0 }
   0xe   :  { %24 = vsyncpa [#allocation4], 0 }
   0xf   :  { %26 = vsyncpa [#allocation4 + $0x1], 0  ;;  %s2593_s17 = smov 0   ;;  %s2595_s18 = smov 0  }
  0x10   :  { %s2597_s19 = smov 0   ;;  %s2599_s20 = smov 0  }
  0x11 LB: > { %3106 = sst [smem:[#allocation20_spill]] %s2503_s17  ;;  %s2517_s21 = smov [#allocation8]   ;;  %s2515_s20 = sphi %s2599_s20, %s3148_s20   ;;  %s2511_s19 = sphi %s2597_s19, %s3152_s19   ;;  %s2507_s18 = sphi %s2595_s18, %s3151_s18   ;;  %s2503_s17 = sphi %s2593_s17, %s3150_s17  }
  0x12   : > { %3107 = sst [smem:[#allocation21_spill]] %s2515_s20  ;;  %s321_s22 = sshll.u32 %s2517_s21, 4  ;;  %s2619_s22 = int_to_ptr.vmem [resolvable:$true] %s321_s22 }
  0x13   : > { %s2614_s23 = sadd.s32 4294967295, %s2515_s20   ;;  %p1916_p0 = scmp.ge.s32.totalorder %s2515_s20, 1 }
  0x14   : > { %p3085_p1 = scmp.eq.s32.totalorder %s2614_s23, 0  ;;  %p309_p2 = scmp.lt.s32.totalorder %s2515_s20, 3 }
  0x15   : > { %s2518_s25 = smov [#allocation11]   ;;  %s3110_s3 = sld [smem:[#allocation27_spill]] }
  0x16   : > { %p2621_p3 = pnand %p1916_p0, %p309_p2  ;;  %s353_s26 = sshll.u32 %s2518_s25, 4  ;;  %s2634_s26 = int_to_ptr.vmem [resolvable:$true] %s353_s26 }
  0x18   : > { %s3108_s24 = scalar_select %p2621_p3, 1, 0 }
  0x19   : > { %p2138_p5 = pneg %p2621_p3 }
  0x1b   : > { %p2630_p6 = pnand %p2138_p5, %p3085_p1  ;;  %s2235_s30 = scalar_lea.hbm %s3110_s3, 512 }
  0x1c   : > { %p2236_p7 = scmp.ne.s32.totalorder %s3110_s3, %s2235_s30  ;;  %p2242_p11 = scmp.lt.u32.totalorder %s2235_s30, %s3110_s3 }
  0x1d   : > { %s3109_s27 = scalar_select %p2630_p6, 1, 0 }
  0x1e   : > { %p2644_p8 = pneg %p2630_p6 }
  0x20   : > { %s3111_s14 = scalar_select %p2644_p8, 1, 0 }
  0x21   : > { %p2238_p9 = pnand %p2644_p8, %p2236_p7 }
  0x23   : > { %p2239_p10 = pneg %p2238_p9 }
  0x25   : > { %p2244_p12 = pnand %p2242_p11, %p2239_p10 }
  0x27   : > { %2247 = shalt.err (!%p2244_p12)
}
  0x28   : > { %s2248_s21 = scalar_lea.vmem %s2619_s22, 512  ;;  %p2256_p5 = scmp.lt.s32.totalorder %s2619_s22, %s2619_s22 }
  0x29   : > { %p2249_p13 = scmp.ne.s32.totalorder %s2619_s22, %s2248_s21  ;;  %p2257_p4 = scmp.lt.s32.totalorder %s2248_s21, %s2248_s21 }
  0x2b   : > { %p2251_p0 = pnand %p2249_p13, %p2644_p8  ;;  %p2258_p7 = por %p2257_p4, %p2256_p5 }
  0x2d   : > { %p2252_p2 = pneg %p2251_p0 }
  0x2f   : > { %p2259_p9 = pnand %p2258_p7, %p2252_p2 }
  0x31   : > { %2262 = shalt.err (!%p2259_p9)
}
  0x32   : > { %s3077_s25 = smov 128   ;;  %s3078_s28 = smov 8  }
  0x33   : > { %2141 = dma.hbm_to_vmem [thread:$0]  (!%p2630_p6), %s3110_s3, 512, %s2619_s22, [#allocation9], %s3077_s25, %s3077_s25, %s3078_s28  }
  0x34   : > { %s3112_s7 = sld [smem:[#allocation29_spill]] }
  0x3a   : > { %s2263_s15 = scalar_lea.hbm %s3112_s7, 512 }
  0x3b   : > { %p2264_p4 = scmp.ne.s32.totalorder %s3112_s7, %s2263_s15  ;;  %p2270_p12 = scmp.lt.u32.totalorder %s2263_s15, %s3112_s7 }
  0x3d   : > { %p2266_p10 = pnand %p2264_p4, %p2644_p8 }
  0x3f   : > { %p2267_p11 = pneg %p2266_p10 }
  0x41   : > { %p2272_p13 = pnand %p2270_p12, %p2267_p11 }
  0x43   : > { %2275 = shalt.err (!%p2272_p13)
}
  0x44   : > { %s2276_s22 = scalar_lea.vmem %s2634_s26, 512  ;;  %p2284_p7 = scmp.lt.s32.totalorder %s2634_s26, %s2634_s26 }
  0x45   : > { %p2277_p0 = scmp.ne.s32.totalorder %s2634_s26, %s2276_s22  ;;  %p2285_p9 = scmp.lt.s32.totalorder %s2276_s22, %s2276_s22 }
  0x47   : > { %p2279_p2 = pnand %p2277_p0, %p2644_p8  ;;  %p2286_p4 = por %p2285_p9, %p2284_p7 }
  0x49   : > { %p2280_p5 = pneg %p2279_p2 }
  0x4b   : > { %p2287_p10 = pnand %p2286_p4, %p2280_p5 }
  0x4d   : > { %2290 = shalt.err (!%p2287_p10)
}
  0x4e   : > { %2147 = dma.hbm_to_vmem [thread:$0]  (!%p2630_p6), %s3112_s7, 512, %s2634_s26, [#allocation12], %s3077_s25, %s3077_s25, %s3078_s28  }
  0x4f   : > { %s1915_s29 = sadd.s32 4294967294, %s2515_s20   ;;  %s2696_s30 = sadd.s32 1, %s2515_s20  }
  0x50   : > { %3113 = sst [smem:[#allocation22_spill]] %s2696_s30  ;;  %s36_s12 = ssub.s32 %s2515_s20, %s2696_s30 }
  0x51   : > { %s39_s13 = sadd.s32 1, %s2511_s19  ;;  %p37_p11 = scmp.eq.s32.totalorder %s36_s12, 0 }
  0x52   : > { %p46_p12 = scmp.ne.s32.totalorder %s2511_s19, %s2507_s18  ;;  %p47_p13 = scmp.eq.s32.totalorder %s2515_s20, 0 }
  0x53   : > { %p52_p0 = scmp.ne.s32.totalorder %s2507_s18, %s2503_s17  ;;  %p296_p7 = scmp.eq.s32.totalorder %s2614_s23, 1 }
  0x54   : > { %s2707_s15 = scalar_select %p37_p11, %s2511_s19, %s39_s13  }
  0x55   : > { %p48_p2 = por %p47_p13, %p46_p12  ;;  %p2711_p5 = por %p3085_p1, %p52_p0 }
  0x56   : > { %3114 = sst [smem:[#allocation23_spill]] %s2707_s15  ;;  %p302_p9 = scmp.eq.s32.totalorder %s1915_s29, 1 }
  0x57   : > { %s3115_s16 = scalar_select %p2711_p5, 1, 0 }
  0x58   : > { %p2169_p4 = scmp.lt.s32.totalorder %s2515_s20, 2  ;;  %s3079_s26 = sand.u32 1, %s2511_s19  }
  0x59   : > { %p2718_p10 = por %p296_p7, %p46_p12  ;;  %p2722_p3 = por %p302_p9, %p52_p0 }
  0x5a   : > { %s2728_s10 = sshll.u32 %s3079_s26, 3  ;;  %s2731_s11 = sshll.u32 %s2515_s20, 7 }
  0x5b   : > { %s3116_s21 = scalar_select %p2718_p10, 1, 0 }
  0x5c   : > { %s3118_s22 = scalar_select %p2722_p3, 1, 0 }
  0x5d   : > { %3117 = sst [smem:[#allocation24_spill]] %s3116_s21  ;;  %p2733_p11 = pnand %p2169_p4, %p48_p2 }
  0x5e   : > { %3119 = sst [smem:[#allocation25_spill]] %s3118_s22  ;;  %s402_s29 = sand.u32 1, %s2515_s20  }
  0x5f   : > { %s3120_s12 = scalar_select %p2733_p11, 1, 0 }
  0x60   : > { %s3121_s1 = sld [smem:[#allocation26_spill]]  ;;  %s406_s26 = scalar_lea.vmem [#allocation5], %s2728_s10 }
  0x61   : > { %s413_s3 = sshll.u32 %s406_s26, 4  ;;  %s2521_s7 = smov [#allocation10]   ;;  %s2745_s3 = int_to_ptr.vmem [resolvable:$true] %s413_s3 }
  0x62   : > { %s2747_s15 = sshll.u32 %s2521_s7, 4  ;;  %s2749_s30 = scalar_lea.sflag [#allocation6], %s402_s29  ;;  %s338_s15 = int_to_ptr.vmem [resolvable:$true] %s2747_s15 }
  0x63   : > { %p2755_p13 = pneg %p2733_p11 }
  0x65   : > { %s3122_s25 = scalar_select %p2755_p13, 1, 0 }
  0x66   : > { %s2742_s28 = scalar_lea.hbm %s3121_s1, %s2731_s11  ;;  %s2296_s20 = scalar_lea.hbm %s3121_s1, 256 }
  0x67   : > { %s2291_s22 = scalar_lea.hbm %s2742_s28, 128  ;;  %p2297_p7 = scmp.lt.u32.totalorder %s2742_s28, %s3121_s1 }
  0x68   : > { %p2292_p12 = scmp.ne.s32.totalorder %s2742_s28, %s2291_s22  ;;  %p2298_p9 = scmp.lt.u32.totalorder %s2296_s20, %s2291_s22 }
  0x69   : > { %p2300_p1 = scmp.lt.u32.totalorder %s2291_s22, %s2742_s28 }
  0x6a   : > { %p2294_p0 = pnand %p2755_p13, %p2292_p12  ;;  %p2299_p4 = por %p2298_p9, %p2297_p7 }
  0x6c   : > { %p2295_p2 = pneg %p2294_p0  ;;  %p2301_p3 = por %p2300_p1, %p2299_p4 }
  0x6e   : > { %p2302_p10 = pnand %p2301_p3, %p2295_p2 }
  0x70   : > { %2305 = shalt.err (!%p2302_p10)
}
  0x71   : > { %s2306_s29 = scalar_lea.vmem %s2745_s3, 128  ;;  %s2522_s13 = smov [#allocation5]  }
  0x72   : > { %p2307_p12 = scmp.ne.s32.totalorder %s2745_s3, %s2306_s29  ;;  %s2311_s26 = sshll.u32 %s2522_s13, 4  ;;  %s2312_s26 = int_to_ptr.vmem [resolvable:$false] %s2311_s26 }
  0x73   : > { %s2313_s17 = scalar_lea.vmem %s2312_s26, 256  ;;  %p2314_p6 = scmp.lt.s32.totalorder %s2745_s3, %s2312_s26 }
  0x74   : > { %p2309_p0 = pnand %p2307_p12, %p2755_p13  ;;  %p2315_p8 = scmp.lt.s32.totalorder %s2313_s17, %s2306_s29 }
  0x76   : > { %p2310_p5 = pneg %p2309_p0  ;;  %p2316_p7 = por %p2315_p8, %p2314_p6 }
  0x78   : > { %p2317_p9 = pnand %p2316_p7, %p2310_p5 }
  0x7a   : > { %2320 = shalt.err (!%p2317_p9)
}
  0x7b   : > { %2157 = dma.hbm_to_vmem [thread:$0]  (!%p2733_p11), %s2742_s28, 128, %s2745_s3, %s2749_s30  }
  0x7c   : > { %s2321_s7 = scalar_lea.hbm %s3068_s5, 512  ;;  %p3123_p3 = scmp.ne.s32.totalorder %s3111_s14, 0 }
  0x7d   : > { %p2322_p1 = scmp.ne.s32.totalorder %s3068_s5, %s2321_s7  ;;  %p2328_p5 = scmp.lt.u32.totalorder %s2321_s7, %s3068_s5 }
  0x7f   : > { %p2324_p6 = pnand %p2322_p1, %p3123_p3 }
  0x81   : > { %p2325_p8 = pneg %p2324_p6 }
  0x83   : > { %p2330_p10 = pnand %p2328_p5, %p2325_p8 }
  0x85   : > { %2333 = shalt.err (!%p2330_p10)
}
  0x86   : > { %s2334_s17 = scalar_lea.vmem %s338_s15, 512  ;;  %p2342_p0 = scmp.lt.s32.totalorder %s338_s15, %s338_s15 }
  0x87   : > { %p2335_p2 = scmp.ne.s32.totalorder %s338_s15, %s2334_s17  ;;  %p2343_p7 = scmp.lt.s32.totalorder %s2334_s17, %s2334_s17 }
  0x89   : > { %p2337_p4 = pnand %p2335_p2, %p3123_p3  ;;  %p2344_p9 = por %p2343_p7, %p2342_p0 }
  0x8b   : > { %p2338_p12 = pneg %p2337_p4 }
  0x8d   : > { %p2345_p11 = pnand %p2344_p9, %p2338_p12 }
  0x8f   : > { %2348 = shalt.err (!%p2345_p11)
}
  0x90   : > { %p3124_p1 = scmp.ne.s32.totalorder %s3109_s27, 0  ;;  %s3125_s1 = smov 8  }
  0x91   : > { %s3126_s3 = smov 128   ;;  %s2523_s22 = smov [#allocation13]  }
  0x92   : > { %2144 = dma.hbm_to_vmem [thread:$0]  (!%p3124_p1), %s3068_s5, 512, %s338_s15, [#allocation9], %s3126_s3, %s3126_s3, %s3125_s1  }
  0x93   : > { %s367_s7 = sshll.u32 %s2523_s22, 4  ;;  %s2349_s26 = scalar_lea.hbm %s3071_s8, 16  ;;  %s368_s7 = int_to_ptr.vmem [resolvable:$true] %s367_s7 }
  0x94   : > { %p2350_p11 = scmp.ne.s32.totalorder %s3071_s8, %s2349_s26  ;;  %p2356_p5 = scmp.lt.u32.totalorder %s2349_s26, %s3071_s8 }
  0x96   : > { %p2352_p6 = pnand %p2350_p11, %p3123_p3 }
  0x98   : > { %p2353_p8 = pneg %p2352_p6 }
  0x9a   : > { %p2358_p10 = pnand %p2356_p5, %p2353_p8 }
  0x9c   : > { %2361 = shalt.err (!%p2358_p10)
}
  0x9d   : > { %s2362_s15 = scalar_lea.vmem %s368_s7, 16  ;;  %s2369_s1 = scalar_lea.vmem %s368_s7, 32 }
  0x9e   : > { %p2363_p2 = scmp.ne.s32.totalorder %s368_s7, %s2362_s15  ;;  %p2370_p0 = scmp.lt.s32.totalorder %s368_s7, %s368_s7 }
  0x9f   : > { %p2371_p7 = scmp.lt.s32.totalorder %s2369_s1, %s2362_s15 }
  0xa0   : > { %p2365_p4 = pnand %p2363_p2, %p3123_p3 }
  0xa1   : > { %p2372_p9 = por %p2371_p7, %p2370_p0 }
  0xa2   : > { %p2366_p12 = pneg %p2365_p4 }
  0xa4   : > { %p2373_p13 = pnand %p2372_p9, %p2366_p12 }
  0xa6   : > { %2376 = shalt.err (!%p2373_p13)
}
  0xa7   : > { %2150 = dma.hbm_to_vmem [thread:$0]  (!%p3124_p1), %s3071_s8, 16, %s368_s7, [#allocation12]  }
  0xa8   : > { %s2823_s14 = scalar_lea.hbm %s3063_s0, %s2731_s11  ;;  %s388_s28 = scalar_lea.vmem [#allocation2], %s2728_s10 }
  0xa9   : > { %s395_s20 = sshll.u32 %s388_s28, 4  ;;  %s3127_s27 = sand.u32 1, %s2511_s19   ;;  %s396_s20 = int_to_ptr.vmem [resolvable:$true] %s395_s20 }
  0xaa   : > { %s385_s22 = scalar_lea.sflag [#allocation3], %s3127_s27  ;;  %s2377_s13 = scalar_lea.hbm %s2823_s14, 128 }
  0xab   : > { %p2378_p13 = scmp.ne.s32.totalorder %s2823_s14, %s2377_s13  ;;  %p3128_p3 = scmp.ne.s32.totalorder %s3122_s25, 0 }
  0xac   : > { %s2382_s26 = scalar_lea.hbm %s3063_s0, 256  ;;  %p2383_p1 = scmp.lt.u32.totalorder %s2823_s14, %s3063_s0 }
  0xad   : > { %p2380_p11 = pnand %p2378_p13, %p3128_p3  ;;  %p2384_p8 = scmp.lt.u32.totalorder %s2382_s26, %s2377_s13 }
  0xae   : > { %p2386_p10 = scmp.lt.u32.totalorder %s2377_s13, %s2823_s14 }
  0xaf   : > { %p2381_p6 = pneg %p2380_p11  ;;  %p2385_p5 = por %p2384_p8, %p2383_p1 }
  0xb1   : > { %p2387_p2 = por %p2386_p10, %p2385_p5 }
  0xb3   : > { %p2388_p4 = pnand %p2387_p2, %p2381_p6 }
  0xb5   : > { %2391 = shalt.err (!%p2388_p4)
}
  0xb6   : > { %s2392_s1 = scalar_lea.vmem %s396_s20, 128  ;;  %s2524_s21 = smov [#allocation2]  }
  0xb7   : > { %p2393_p12 = scmp.ne.s32.totalorder %s396_s20, %s2392_s1  ;;  %s2397_s3 = sshll.u32 %s2524_s21, 4  ;;  %s2398_s3 = int_to_ptr.vmem [resolvable:$false] %s2397_s3 }
  0xb8   : > { %s2399_s4 = scalar_lea.vmem %s2398_s3, 256  ;;  %p2400_p9 = scmp.lt.s32.totalorder %s396_s20, %s2398_s3 }
  0xb9   : > { %p2395_p0 = pnand %p2393_p12, %p3128_p3  ;;  %p2401_p13 = scmp.lt.s32.totalorder %s2399_s4, %s2392_s1 }
  0xbb   : > { %p2396_p7 = pneg %p2395_p0  ;;  %p2402_p11 = por %p2401_p13, %p2400_p9 }
  0xbd   : > { %p2403_p1 = pnand %p2402_p11, %p2396_p7 }
  0xbf   : > { %2406 = shalt.err (!%p2403_p1)
}
  0xc0   : > { %p3129_p8 = scmp.ne.s32.totalorder %s3120_s12, 0  ;;  %s2849_s27 = scalar_lea.hbm %s3065_s2, %s2731_s11 }
  0xc1   : > { %s424_s13 = scalar_lea.vmem [#allocation7], %s2728_s10  ;;  %s2407_s29 = scalar_lea.hbm %s2849_s27, 128 }
  0xc2   : > { %2154 = dma.hbm_to_vmem [thread:$0]  (!%p3129_p8), %s2823_s14, 128, %s396_s20, %s385_s22  }
  0xc3   : > { %s431_s7 = sshll.u32 %s424_s13, 4  ;;  %p2408_p6 = scmp.ne.s32.totalorder %s2849_s27, %s2407_s29  ;;  %s432_s7 = int_to_ptr.vmem [resolvable:$true] %s431_s7 }
  0xc4   : > { %s2412_s14 = scalar_lea.hbm %s3065_s2, 256  ;;  %p2413_p2 = scmp.lt.u32.totalorder %s2849_s27, %s3065_s2 }
  0xc5   : > { %p2410_p5 = pnand %p2408_p6, %p3128_p3  ;;  %p2414_p4 = scmp.lt.u32.totalorder %s2412_s14, %s2407_s29 }
  0xc6   : > { %p2416_p0 = scmp.lt.u32.totalorder %s2407_s29, %s2849_s27 }
  0xc7   : > { %p2411_p10 = pneg %p2410_p5  ;;  %p2415_p12 = por %p2414_p4, %p2413_p2 }
  0xc9   : > { %p2417_p7 = por %p2416_p0, %p2415_p12 }
  0xcb   : > { %p2418_p9 = pnand %p2417_p7, %p2411_p10 }
  0xcd   : > { %2421 = shalt.err (!%p2418_p9)
}
  0xce   : > { %s2422_s10 = scalar_lea.vmem %s432_s7, 128  ;;  %s2525_s11 = smov [#allocation7]  }
  0xcf   : > { %p2423_p13 = scmp.ne.s32.totalorder %s432_s7, %s2422_s10  ;;  %s2427_s15 = sshll.u32 %s2525_s11, 4  ;;  %s2428_s15 = int_to_ptr.vmem [resolvable:$false] %s2427_s15 }
  0xd0   : > { %s2429_s1 = scalar_lea.vmem %s2428_s15, 256  ;;  %p2430_p6 = scmp.lt.s32.totalorder %s432_s7, %s2428_s15 }
  0xd1   : > { %p2425_p11 = pnand %p2423_p13, %p3128_p3  ;;  %p2431_p5 = scmp.lt.s32.totalorder %s2429_s1, %s2422_s10 }
  0xd3   : > { %p2426_p1 = pneg %p2425_p11  ;;  %p2432_p8 = por %p2431_p5, %p2430_p6 }
  0xd5   : > { %p2433_p2 = pnand %p2432_p8, %p2426_p1 }
  0xd7   : > { %2436 = shalt.err (!%p2433_p2)
}
  0xd8   : > { %p3130_p4 = scmp.ne.s32.totalorder %s3120_s12, 0  ;;  %p3131_p10 = scmp.ne.s32.totalorder %s3108_s24, 0 }
  0xd9   : > { %s2873_s25 = sand.u32 (!%p3131_p10), 1, %s2507_s18   ;;  %p3132_p3 = scmp.ne.s32.totalorder (!%p3131_p10), %s3115_s16, 0 }
  0xda   : > { %2160 = dma.hbm_to_vmem [thread:$0]  (!%p3130_p4), %s2849_s27, 128, %s432_s7, %s2749_s30  }
  0xdb   : > { %440 = sbr.rel (%p3131_p10) target bundleno = 2819 (0xb03), region = 64  ;;  %s2876_s21 = sshll.u32 (!%p3131_p10), %s2873_s25, 3 }
  0xdc   : > { %s443_s3 = scalar_lea.sflag (!%p3131_p10), [#allocation3], %s2873_s25  ;;  %s446_s4 = scalar_lea.vmem (!%p3131_p10), [#allocation2], %s2876_s21 }
  0xe2   : > { %2482 = dma.done.wait (%p3132_p3), %s443_s3, 128  }
  0xe3   : > { %2484 = vsyncadd (%p3132_p3), %s443_s3, 4294967168  ;;  %s451_s24 = sand.u32 1, %s2614_s23   ;;  %s455_s12 = scalar_lea.vmem [#allocation5], %s2876_s21 }
  0xe4   : > { %s452_s30 = scalar_lea.sflag [#allocation6], %s451_s24 }
  0xe5   : > { %2486 = dma.done.wait (%p3132_p3), %s452_s30, 256  }
  0xe6   : > { %2488 = vsyncadd (%p3132_p3), %s452_s30, 4294967040  ;;  %s464_s9 = scalar_lea.vmem [#allocation7], %s2876_s21  ;;  %p3133_p8 = scmp.eq.s32.totalorder %s2614_s23, 0 }
  0xe8   : > { %2490 = dma.done.wait (%p3133_p8), [#allocation9], 1024   ;;  %p3134_p12 = pmov %p3133_p8 }
  0xe9   : > { %p3135_p0 = pmov %p3133_p8 }
  0xea   : > { %2492 = vsyncadd (%p3134_p12), [#allocation9], 4294966272 }
  0xeb   : > { %2494 = dma.done.wait (%p3135_p0), [#allocation12], 528   ;;  %p3136_p7 = pmov %p3135_p0 }
  0xec   : > { %v2526_v0 = vmov 0.0|0.0   ;;  %vm2527_vm0 = vmmov 0   ;;  %v2528_v1 = vmov 0.0   ;;  %v617_v2 = vld [vmem:[#allocation10] sm:$0xff]  ;;  %v618_v3 = vld [vmem:[#allocation10 + $0x8] sm:$0xff]  ;;  %v619_v7 = vld [vmem:[#allocation10 + $0x10] sm:$0xff] }
  0xed   : > { %2496 = vsyncadd (%p3136_p7), [#allocation12], 4294966768  ;;  %2102 = vmatprep.subr.bf16.mxu1 %v2526_v0  ;;  %2096 = vmatprep.subr.bf16.mxu0 %v2526_v0  ;;  %v530_v4 = vld [vmem:[#allocation8] sm:$0xff]  ;;  %v2103_v5 = vpack.c.bf16 %v618_v3, %v617_v2  ;;  %v531_v6 = vld [vmem:[#allocation8 + $0x8] sm:$0xff]  ;;  %vm541_vm1 = vcmask 261120   ;;  %s3137_s7 = sld [smem:[#allocation28_spill]] }
  0xee   : > { %2022 = vmatprep.mubr.msk.f32.mxu1 %vm2527_vm0, %v2528_v1  ;;  %2011 = vmatprep.mubr.msk.f32.mxu0 %vm2527_vm0, %v2528_v1  ;;  %v620_v8 = vld [vmem:[#allocation10 + $0x18] sm:$0xff]  ;;  %v2097_v9 = vpack.c.bf16 %v531_v6, %v530_v4  ;;  %v532_v10 = vld [vmem:[#allocation8 + $0x10] sm:$0xff]  ;;  %v616_v14 = vld [vmem:[%s455_s12] sm:$0xff]  ;;  %vm786_vm2 = vcmask 64512   ;;  %s2529_s29 = smov 120   ;;  %s2530_s26 = smov 112  }
  0xef   : > { %v533_v11 = vld [vmem:[#allocation8 + $0x18] sm:$0xff]  ;;  %2104 = vmatpush3.bf16.msra.mxu1 %v2103_v5  ;;  %v2106_v12 = vpack.c.bf16 %v620_v8, %v619_v7  ;;  %v702_v16 = vld [vmem:[#allocation11] sm:$0xff]  ;;  %v703_v17 = vld [vmem:[#allocation11 + $0x8] sm:$0xff]  ;;  %s2531_s17 = smov 104   ;;  %s3138_s22 = sld [smem:[#allocation30_spill]] }
  0xf0   : > { %2098 = vmatpush3.bf16.msra.mxu0 %v2097_v9  ;;  %2105 = vmatprep.subr.bf16.mxu1 %v2526_v0  ;;  %v2100_v13 = vpack.c.bf16 %v533_v11, %v532_v10  ;;  %v529_v15 = vld [vmem:[%s446_s4] sm:$0xff]  ;;  %v2109_v19 = vpack.c.bf16 %v703_v17, %v702_v16  ;;  %v1941_v34 = vld [vmem:[#allocation13] ss:$0 sm:$0xff]  ;;  %s3139_s24 = sld [smem:[#allocation24_spill]]  ;;  %s1961_s16 = sshll.u32 %s2614_s23, 7 }
  0xf1   : > { %2099 = vmatprep.subr.bf16.mxu0 %v2526_v0  ;;  %v704_v18 = vld [vmem:[#allocation11 + $0x10] sm:$0xff]  ;;  %v705_v20 = vld [vmem:[#allocation11 + $0x18] sm:$0xff]  ;;  %s528_s28 = scalar_lea.vmem [#allocation14], %s2876_s21  ;;  %s2532_s23 = smov [#allocation14]  }
  0xf2   : > { %v2112_v21 = vpack.c.bf16 %v705_v20, %v704_v18  ;;  %v701_v22 = vld [vmem:[%s464_s9] sm:$0xff]  ;;  %s3140_s9 = sld [smem:[#allocation31_spill]]  ;;  %s1764_s27 = sshll.u32 %s528_s28, 4  ;;  %s3020_s27 = int_to_ptr.vmem [resolvable:$true] %s1764_s27 }
  0xf3   : > { %2107 = vmatpush3.bf16.msra.mxu1 %v2106_v12  ;;  %v1939_v23 = vld [vmem:[%s3069_s6] ss:$0 sm:$0xff]  ;;  %s2437_s14 = scalar_lea.vmem %s3020_s27, 128  ;;  %s2441_s21 = sshll.u32 %s2532_s23, 4  ;;  %s2442_s21 = int_to_ptr.vmem [resolvable:$false] %s2441_s21 }
  0xf4   : > { %2101 = vmatpush3.bf16.msra.mxu0 %v2100_v13  ;;  %2036 = vmatprep.subr.mxu1 %v2528_v1  ;;  %v1937_v24 = vld [vmem:[%s3137_s7] ss:$0 sm:$0xff]  ;;  %p2438_p9 = scmp.ne.s32.totalorder %s3020_s27, %s2437_s14  ;;  %s2443_s20 = scalar_lea.vmem %s2442_s21, 256 }
  0xf5   : > { %2108 = vmatprep.subr.bf16.mxu0 %v2526_v0  ;;  %v1114_v57 = vld [vmem:[%s3138_s22 + $0x8] sm:$0xff]  ;;  %v947_v62 = vld [vmem:[%s3138_s22] sm:$0xff]  ;;  %p2444_p6 = scmp.lt.s32.totalorder %s3020_s27, %s2442_s21  ;;  %p2445_p5 = scmp.lt.s32.totalorder %s2443_s20, %s2437_s14 }
  0xf6   : > { %2023 = vmatmul.mubr.msk.f32.vlgmr.msra.gmra.mrb[0].mxu1 %vm541_vm1, %v616_v14  ;;  %p3142_p13 = scmp.ne.s32.totalorder %s3139_s24, 0 }
  0xf7   : > { %2012 = vmatmul.mubr.msk.f32.vlgmr.msra.gmra.mrb[0].mxu0 %vm541_vm1, %v529_v15  ;;  %2038 = vmatprep.mubr.msk.f32.mxu1 %vm2527_vm0, %v2528_v1  ;;  %p2446_p2 = por %p2445_p5, %p2444_p6 }
  0xf8   : > { %2033 = vmatprep.mubr.msk.f32.mxu0 %vm2527_vm0, %v2528_v1  ;;  %2110 = vmatpush3.bf16.msra.mxu0 %v2109_v19  ;;  %p2439_p11 = pnand %p2438_p9, %p3142_p13 }
  0xf9   : > { %2111 = vmatprep.subr.bf16.mxu0 %v2526_v0 }
  0xfa   : > { %p2440_p1 = pneg %p2439_p11 }
  0xfc   : > { %2113 = vmatpush3.bf16.msra.mxu0 %v2112_v21  ;;  %p2447_p4 = pnand %p2446_p2, %p2440_p1 }
  0xfd   : > { %2046 = vmatprep.subr.mxu0 %v2528_v1 }
  0xff   : > { %2034 = vmatmul.mubr.msk.f32.vlgmr.msra.gmra.mrb[2].mxu0 %vm541_vm1, %v701_v22 }
 0x100   : > { %2048 = vmatprep.mubr.msk.f32.mxu0 %vm2527_vm0, %v2528_v1 }
 0x1c9   : > { %v697_v25 = vpop.f32.mrb[0].mxu1 }
 0x1ca   : > { %v698_v26 = vadd.f32 %v1939_v23, %v697_v25  ;;  %v611_v27 = vpop.f32.mrb[0].mxu0  ;;  %v2024_v28 = vpop.f32.mrb[1].mxu1  ;;  %v1426_v25 = vld [vmem:[%s3138_s22 + $0x10] sm:$0xff] }
 0x1cb   : > { %v612_v29 = vadd.f32 %v1937_v24, %v611_v27  ;;  %v2013_v30 = vpop.f32.mrb[1].mxu0 }
 0x1cc   : > { %950 = vrot.lane.b32.xlu0 %v698_v26, %s2529_s29  ;;  %2037 = vmatpush3.xpose.msk.msra.mxu1 %vm786_vm2, %v698_v26 }
 0x1cd   : > { %v2928_v31 = vmul.f32 0.35355338, %v612_v29  ;;  %2041 = vmatprep.subr.mxu1 %v2528_v1 }
 0x1cf   : > { %2039 = vmatmul.mubr.msk.f32.vlgmr.msra.gmra.mrb[2].mxu1 %vm786_vm2, %v2928_v31 }
 0x1d0   : > { %948 = vrot.lane.b32.xlu0 %v2928_v31, %s2529_s29  ;;  %2043 = vmatprep.mubr.msk.f32.mxu1 %vm2527_vm0, %v2528_v1 }
 0x1d2   : > { %v782_v35 = vpop.f32.mrb[2].mxu0 }
 0x1d3   : > { %v2942_v36 = vadd.f32 %v1941_v34, %v782_v35  ;;  %v2035_v37 = vpop.f32.mrb[3].mxu0 }
 0x1d5   : > { %2042 = vmatpush3.msra.mxu1 %v2942_v36 }
 0x1d6   : > { %2051 = vmatprep.subr.mxu1 %v2528_v1 }
 0x23e   : > { %v951_v32 = vpop.permute.xlu0 %950 }
 0x23f   : > { %2047 = vmatpush3.xpose.msk.msra.mxu0 %vm786_vm2, %v951_v32 }
 0x240   : > { %2056 = vmatprep.subr.mxu0 %v2528_v1 }
 0x242   : > { %v949_v33 = vpop.permute.xlu0 %948 }
 0x243   : > { %2049 = vmatmul.mubr.msk.f32.vlgmr.msra.gmra.mrb[4].mxu0 %vm786_vm2, %v949_v33 }
 0x244   : > { %2058 = vmatprep.mubr.msk.f32.mxu0 %vm2527_vm0, %v2528_v1  ;;  %2057 = vmatpush3.msra.mxu0 %v1114_v57 }
 0x245   : > { %2066 = vmatprep.subr.mxu0 %v2528_v1 }
 0x2a2   : > { %v859_v38 = vpop.f32.mrb[2].mxu1 }
 0x2a3   : > { %v2040_v39 = vpop.f32.mrb[3].mxu1  ;;  %v863_v40 = vsel %vm786_vm2, %v859_v38, -inf }
 0x2a4   : > { %864 = vmax.xlane.f32.xlu1 %v863_v40 }
 0x316   : > { %v1022_v41 = vpop.f32.mrb[4].mxu0 }
 0x317   : > { %v2050_v42 = vpop.f32.mrb[5].mxu0  ;;  %v1026_v43 = vsel %vm786_vm2, %v1022_v41, -inf }
 0x318   : > { %1027 = vmax.xlane.f32.xlu1 %v1026_v43 }
 0x331   : > { %v865_v44 = vpop.xlane.xlu1 %864 }
 0x332   : > { %v866_v45 = vsub.f32 %v859_v38, %v865_v44 }
 0x334   : > { %v867_v46 = vmul.f32 1.442695, %v866_v45 }
 0x336   : > { %2219 = vpow2.f32 %v867_v46  ;;  %v1959_v46 = vld [vmem:[%s3140_s9] ss:$0 sm:$0xff] }
 0x340   : > { %v2220_v47 = vpop.eup %2219 }
 0x341   : > { %v869_v48 = vsel %vm786_vm2, %v2220_v47, 0.0 }
 0x342   : > { %870 = vadd.xlane.f32.xlu0 %v869_v48 }
 0x358   : > { %1350 = vrot.lane.b32.xlu0 %v2942_v36, %s2530_s26 }
 0x35c   : > { %1503 = vrot.lane.b32.xlu0 %v698_v26, %s2531_s17 }
 0x3a5   : > { %v1028_v49 = vpop.xlane.xlu1 %1027 }
 0x3a6   : > { %v1029_v50 = vsub.f32 %v1022_v41, %v1028_v49 }
 0x3a8   : > { %v1030_v51 = vmul.f32 1.442695, %v1029_v50 }
 0x3aa   : > { %2221 = vpow2.f32 %v1030_v51 }
 0x3b4   : > { %v2222_v52 = vpop.eup %2221 }
 0x3b5   : > { %v1032_v53 = vsel %vm786_vm2, %v2222_v52, 0.0 }
 0x3b6   : > { %1033 = vadd.xlane.f32.xlu1 %v1032_v53 }
 0x3c7   : > { %1038 = vrot.lane.b32.xlu1 %v2942_v36, %s2529_s29  ;;  %s3141_s29 = sld [smem:[#allocation32_spill]] }
 0x3cb   : > { %1263 = vrot.lane.b32.xlu1 %v698_v26, %s2530_s26 }
 0x3cf   : > { %v871_v54 = vpop.xlane.xlu0 %870  ;;  %1261 = vrot.lane.b32.xlu1 %v2928_v31, %s2530_s26  ;;  %s3018_s26 = scalar_lea.hbm %s3141_s29, %s1961_s16 }
 0x3d0   : > { %2223 = vrcp.f32 %v871_v54 }
 0x3d3   : > { %v1351_v0 = vpop.permute.xlu0 %1350 }
 0x3d7   : > { %v1504_v20 = vpop.permute.xlu0 %1503 }
 0x3da   : > { %v2224_v55 = vpop.eup %2223 }
 0x3db   : > { %v873_v56 = vmul.f32 %v2224_v55, %v2220_v47 }
 0x3dd   : > { %2044 = vmatmul.mubr.msk.f32.vlgmr.msra.gmra.mrb[4].mxu1 %vm786_vm2, %v873_v56 }
 0x3de   : > { %2053 = vmatprep.mubr.msk.f32.mxu1 %vm2527_vm0, %v2528_v1 }
 0x443   : > { %v1034_v58 = vpop.xlane.xlu1 %1033 }
 0x444   : > { %2225 = vrcp.f32 %v1034_v58 }
 0x447   : > { %v1039_v59 = vpop.permute.xlu1 %1038 }
 0x448   : > { %2052 = vmatpush3.msra.mxu1 %v1039_v59 }
 0x449   : > { %2061 = vmatprep.subr.mxu1 %v2528_v1 }
 0x44b   : > { %v1264_v3 = vpop.permute.xlu1 %1263 }
 0x44e   : > { %v2226_v60 = vpop.eup %2225 }
 0x44f   : > { %v1036_v61 = vmul.f32 %v2226_v60, %v2222_v52  ;;  %v1262_v6 = vpop.permute.xlu1 %1261 }
 0x451   : > { %2054 = vmatmul.mubr.msk.f32.vlgmr.msra.gmra.mrb[6].mxu1 %vm786_vm2, %v1036_v61 }
 0x452   : > { %2062 = vmatpush3.msra.mxu1 %v947_v62  ;;  %2063 = vmatprep.mubr.msk.f32.mxu1 %vm2527_vm0, %v2528_v1 }
 0x453   : > { %2071 = vmatprep.subr.mxu1 %v2528_v1 }
 0x4b0   : > { %v943_v63 = vpop.f32.mrb[4].mxu1 }
 0x4b1   : > { %v2045_v2 = vpop.f32.mrb[5].mxu1  ;;  %2064 = vmatmul.mubr.msk.f32.vlgmr.msra.gmra.mrb[8].mxu1 %vm786_vm2, %v943_v63 }
 0x4b2   : > { %2072 = vmatpush3.msra.mxu1 %v1351_v0  ;;  %2073 = vmatprep.mubr.msk.f32.mxu1 %vm2527_vm0, %v2528_v1 }
 0x4b3   : > { %2081 = vmatprep.subr.mxu1 %v2528_v1 }
 0x524   : > { %v1110_v4 = vpop.f32.mrb[6].mxu1 }
 0x525   : > { %v2055_v5 = vpop.f32.mrb[7].mxu1  ;;  %2059 = vmatmul.mubr.msk.f32.vlgmr.msra.gmra.mrb[6].mxu0 %vm786_vm2, %v1110_v4 }
 0x526   : > { %2067 = vmatpush3.xpose.msk.msra.mxu0 %vm786_vm2, %v1264_v3  ;;  %2068 = vmatprep.mubr.msk.f32.mxu0 %vm2527_vm0, %v2528_v1 }
 0x527   : > { %2076 = vmatprep.subr.mxu0 %v2528_v1 }
 0x529   : > { %2069 = vmatmul.mubr.msk.f32.vlgmr.msra.gmra.mrb[8].mxu0 %vm786_vm2, %v1262_v6 }
 0x52a   : > { %2078 = vmatprep.mubr.msk.f32.mxu0 %vm2527_vm0, %v2528_v1  ;;  %2077 = vmatpush3.msra.mxu0 %v1426_v25 }
 0x52b   : > { %2086 = vmatprep.subr.mxu0 %v2528_v1 }
 0x584   : > { %v1257_v7 = vpop.f32.mrb[8].mxu1 }
 0x585   : > { %v2065_v8 = vpop.f32.mrb[9].mxu1 }
 0x5f8   : > { %v1184_v9 = vpop.f32.mrb[6].mxu0 }
 0x5f9   : > { %v1258_v10 = vadd.f32 %v1257_v7, %v1184_v9  ;;  %v2060_v11 = vpop.f32.mrb[7].mxu0 }
 0x5fc   : > { %v1335_v12 = vpop.f32.mrb[8].mxu0 }
 0x5fd   : > { %v2070_v13 = vpop.f32.mrb[9].mxu0  ;;  %v1339_v14 = vsel %vm786_vm2, %v1335_v12, -inf }
 0x5fe   : > { %1340 = vmax.xlane.f32.xlu1 %v1339_v14 }
 0x68b   : > { %v1341_v15 = vpop.xlane.xlu1 %1340 }
 0x68c   : > { %v1342_v16 = vsub.f32 %v1335_v12, %v1341_v15 }
 0x68e   : > { %v1343_v17 = vmul.f32 1.442695, %v1342_v16 }
 0x690   : > { %2227 = vpow2.f32 %v1343_v17 }
 0x69a   : > { %v2228_v18 = vpop.eup %2227 }
 0x69b   : > { %v1345_v19 = vsel %vm786_vm2, %v2228_v18, 0.0 }
 0x69c   : > { %1346 = vadd.xlane.f32.xlu0 %v1345_v19 }
 0x6b2   : > { %1501 = vrot.lane.b32.xlu0 %v2928_v31, %s2531_s17 }
 0x729   : > { %v1347_v21 = vpop.xlane.xlu0 %1346 }
 0x72a   : > { %2229 = vrcp.f32 %v1347_v21 }
 0x72d   : > { %v1502_v24 = vpop.permute.xlu0 %1501 }
 0x734   : > { %v2230_v22 = vpop.eup %2229 }
 0x735   : > { %v1349_v23 = vmul.f32 %v2230_v22, %v2228_v18 }
 0x737   : > { %2074 = vmatmul.mubr.msk.f32.vlgmr.msra.gmra.mrb[10].mxu1 %vm786_vm2, %v1349_v23 }
 0x738   : > { %2082 = vmatpush3.xpose.msk.msra.mxu1 %vm786_vm2, %v1504_v20  ;;  %2083 = vmatprep.mubr.msk.f32.mxu1 %vm2527_vm0, %v2528_v1 }
 0x739   : > { %2091 = vmatprep.subr.mxu1 %v2528_v1 }
 0x73b   : > { %2084 = vmatmul.mubr.msk.f32.vlgmr.msra.gmra.mrb[12].mxu1 %vm786_vm2, %v1502_v24 }
 0x73c   : > { %2093 = vmatprep.mubr.msk.f32.mxu1 %vm2527_vm0, %v2528_v1 }
 0x80a   : > { %v1422_v26 = vpop.f32.mrb[10].mxu1 }
 0x80b   : > { %v2075_v27 = vpop.f32.mrb[11].mxu1  ;;  %2079 = vmatmul.mubr.msk.f32.vlgmr.msra.gmra.mrb[10].mxu0 %vm786_vm2, %v1422_v26 }
 0x80c   : > { %2088 = vmatprep.mubr.msk.f32.mxu0 %vm2527_vm0, %v2528_v1  ;;  %v1666_v1 = vld [vmem:[%s3138_s22 + $0x18] sm:$0xff] }
 0x80d   : > { %2092 = vmatpush3.msra.mxu1 %v1666_v1 }
 0x80e   : > { %v1575_v28 = vpop.f32.mrb[12].mxu1 }
 0x80f   : > { %v2085_v29 = vpop.f32.mrb[13].mxu1  ;;  %v1579_v30 = vsel %vm786_vm2, %v1575_v28, -inf }
 0x810   : > { %1580 = vmax.xlane.f32.xlu0 %v1579_v30 }
 0x89d   : > { %v1581_v31 = vpop.xlane.xlu0 %1580 }
 0x89e   : > { %v1582_v32 = vsub.f32 %v1575_v28, %v1581_v31 }
 0x8a0   : > { %v1583_v33 = vmul.f32 1.442695, %v1582_v32 }
 0x8a2   : > { %2231 = vpow2.f32 %v1583_v33 }
 0x8ac   : > { %v2232_v34 = vpop.eup %2231 }
 0x8ad   : > { %v1585_v35 = vsel %vm786_vm2, %v2232_v34, 0.0 }
 0x8ae   : > { %1586 = vadd.xlane.f32.xlu1 %v1585_v35 }
 0x8bf   : > { %1590 = vrot.lane.b32.xlu1 %v2942_v36, %s2531_s17  ;;  %s1751_s17 = scalar_lea.sflag [#allocation4], %s2873_s25 }
 0x8de   : > { %v1496_v37 = vpop.f32.mrb[10].mxu0 }
 0x8df   : > { %v1500_v38 = vadd.f32 %v1496_v37, %v1258_v10  ;;  %v2080_v39 = vpop.f32.mrb[11].mxu0 }
 0x93b   : > { %v1587_v40 = vpop.xlane.xlu1 %1586 }
 0x93c   : > { %2233 = vrcp.f32 %v1587_v40 }
 0x93f   : > { %v1591_v41 = vpop.permute.xlu1 %1590 }
 0x940   : > { %2087 = vmatpush3.msra.mxu0 %v1591_v41 }
 0x946   : > { %v2234_v42 = vpop.eup %2233 }
 0x947   : > { %v1589_v43 = vmul.f32 %v2234_v42, %v2232_v34 }
 0x949   : > { %2089 = vmatmul.mubr.msk.f32.vlgmr.msra.gmra.mrb[12].mxu0 %vm786_vm2, %v1589_v43 }
 0xa1c   : > { %v1662_v36 = vpop.f32.mrb[12].mxu0 }
 0xa1d   : > { %v2090_v44 = vpop.f32.mrb[13].mxu0  ;;  %2094 = vmatmul.mubr.msk.f32.vlgmr.msra.gmra.mrb[14].mxu1 %vm786_vm2, %v1662_v36 }
 0xaf0   : > { %v1736_v45 = vpop.f32.mrb[14].mxu1 }
 0xaf1   : > { %v1740_v47 = vadd.f32 %v1736_v45, %v1500_v38  ;;  %v2095_v48 = vpop.f32.mrb[15].mxu1 }
 0xaf3   : > { %v1748_v49 = vadd.f32 %v1959_v46, %v1740_v47 }
 0xaf5   : > { %1749 = vst.msk [vmem:[%s528_s28] sm:$0xff] %vm541_vm1, %v1748_v49 }
 0xaf6   : > { %2450 = shalt.err (!%p2447_p4)
}
 0xaf7   : > { %s2451_s25 = scalar_lea.hbm %s3018_s26, 128  ;;  %s2455_s15 = scalar_lea.hbm %s3141_s29, 256 }
 0xaf8   : > { %p2452_p10 = scmp.ne.s32.totalorder %s3018_s26, %s2451_s25  ;;  %p2456_p12 = scmp.lt.u32.totalorder %s3018_s26, %s3141_s29 }
 0xaf9   : > { %p2457_p0 = scmp.lt.u32.totalorder %s2455_s15, %s2451_s25  ;;  %p2459_p9 = scmp.lt.u32.totalorder %s2451_s25, %s3018_s26 }
 0xafa   : > { %p2453_p3 = pnand %p2452_p10, %p3142_p13 }
 0xafb   : > { %p2458_p7 = por %p2457_p0, %p2456_p12 }
 0xafc   : > { %p2454_p8 = pneg %p2453_p3 }
 0xafd   : > { %p2460_p11 = por %p2459_p9, %p2458_p7 }
 0xaff   : > { %p2461_p1 = pnand %p2460_p11, %p2454_p8 }
 0xb01   : > { %2464 = shalt.err (!%p2461_p1)
}
 0xb02   : > { %2136 = dma.vmem_to_hbm [thread:$0]  (%p3142_p13), %s3020_s27, 128, %s3018_s26, %s1751_s17  }
 0xb03 PF: > { %s3143_s4 = sld [smem:[#allocation20_spill]]  ;;  %s3144_s30 = sld [smem:[#allocation25_spill]] }
 0xb04   : > { %s3145_s12 = sld [smem:[#allocation21_spill]] }
 0xb09   : > { %s1776_s9 = sand.u32 1, %s3143_s4   ;;  %p3146_p6 = scmp.ne.s32.totalorder %s3144_s30, 0 }
 0xb0a   : > { %p3147_p5 = scmp.ge.s32.totalorder %s3145_s12, 2  ;;  %s1777_s16 = scalar_lea.sflag [#allocation4], %s1776_s9 }
 0xb0c   : > { %p2162_p2 = pnand %p3147_p5, %p3146_p6 }
 0xb0e   : > { %2498 = dma.done.wait (!%p2162_p2), %s1777_s16, 128  }
 0xb0f   : > { %2500 = vsyncadd (!%p2162_p2), %s1777_s16, 4294967168  ;;  %s3148_s20 = sld [smem:[#allocation22_spill]]  ;;  %s3149_s28 = sld [smem:[#allocation23_spill]] }
 0xb10   : > { %s3150_s17 = smov %s2507_s18  ;;  %s3151_s18 = smov %s2511_s19 }
 0xb15   : > { %p29_p4 = scmp.ge.s32.totalorder %s3148_s20, 4   ;;  %s3152_s19 = smov %s3149_s28 }
 0xb17   :  { %31 = sbr.rel (!%p29_p4) target bundleno = 17 (0x11), region = 149 }
 0xb1e   :  { %1782 = vsyncpa [#allocation3], 1 }
 0xb1f   :  { %1784 = vsyncpa [#allocation3 + $0x1], 1 }
 0xb20   :  { %1785 = vsyncpa [#allocation6], 1 }
 0xb21   :  { %1787 = vsyncpa [#allocation6 + $0x1], 1 }
 0xb22   :  { %1788 = vsyncpa [#allocation9], 1 }
 0xb23   :  { %1789 = vsyncpa [#allocation12], 1 }
 0xb24   :  { %1790 = vsyncpa [#allocation4], 1 }
 0xb25   :  { %1792 = vsyncpa [#allocation4 + $0x1], 1 }

</bundles_post_ra>
